<compile_context>
chip_gen: v6e
topology: v6e:2x2x1
jax: 0.10.0
libtpu: 0.0.40
codegen_flags: <defaults>
</compile_context>

<pallas_src>
import functools
import math

import jax
import jax.numpy as jnp
import numpy as np
from jax.experimental import pallas as pl
from jax.experimental.pallas import tpu as pltpu


def _mha_step(x_ref, wq_ref, wk_ref, wv_ref, wo_ref,
              bq_ref, bk_ref, bv_ref, bo_ref,
              out_ref, attn_ref, k_scr, v_scr, o_acc,
              *, num_heads, q_tile, inv_sqrt_d):
    """One (batch, q-tile, head) grid step.

    x_ref   : (1, L, D)        bf16  full sequence (resident per batch element)
    wq/wk/wv: (H, D, hd)       bf16  head-major projection weights (in, out)
    wo_ref  : (H, hd, D)       bf16  head-major output-projection weight
    bq/bk/bv: (H, 1, hd)       f32   head-major biases
    bo_ref  : (1, D)           f32
    out_ref : (1, TQ, D)
    attn_ref: (1, 1, TQ, L) or None
    k_scr   : (H, L, hd)       bf16  VMEM K cache (per batch element)
    v_scr   : (H, L, hd)       bf16  VMEM V cache
    o_acc   : (TQ, D)          f32   output accumulator across heads
    """
    qi = pl.program_id(1)
    h = pl.program_id(2)

    # K/V projection for this head over the full sequence: once per (b, h),
    # cached head-major in VMEM scratch and reused by every q-tile.
    @pl.when(qi == 0)
    def _():
        xf = x_ref[0]                                                  # (L, D) bf16
        k = jnp.dot(xf, wk_ref[h], preferred_element_type=jnp.float32) + bk_ref[h]
        v = jnp.dot(xf, wv_ref[h], preferred_element_type=jnp.float32) + bv_ref[h]
        k_scr[h] = k.astype(k_scr.dtype)
        v_scr[h] = v.astype(v_scr.dtype)

    # Q projection for this (q-tile, head); 1/sqrt(d) folded in once, in f32.
    q_start = pl.multiple_of(qi * q_tile, q_tile)
    xq = x_ref[0, pl.ds(q_start, q_tile), :]                           # (TQ, D) bf16
    q = jnp.dot(xq, wq_ref[h], preferred_element_type=jnp.float32) + bq_ref[h]
    q = (q * inv_sqrt_d).astype(jnp.bfloat16)                          # (TQ, hd)

    # Scaled scores (q / sqrt(d)) @ k_h^T without an explicit transpose.
    s = jax.lax.dot_general(q, k_scr[h], (((1,), (1,)), ((), ())),
                            preferred_element_type=jnp.float32)        # (TQ, L)

    # Numerically stable softmax; statistics in f32, reciprocal on the EUP.
    s_max = jnp.max(s, axis=-1, keepdims=True)
    p = jnp.exp(s - s_max)
    p = p * pl.reciprocal(jnp.sum(p, axis=-1, keepdims=True), approx=True)
    p_b = p.astype(jnp.bfloat16)

    if attn_ref is not None:
        attn_ref[0, 0] = p.astype(attn_ref.dtype)

    # Per-head output contribution: (p @ v_h) @ Wo_h, accumulated across heads.
    oh = jnp.dot(p_b, v_scr[h], preferred_element_type=jnp.float32)    # (TQ, hd)
    contrib = jnp.dot(oh.astype(jnp.bfloat16), wo_ref[h],
                      preferred_element_type=jnp.float32)              # (TQ, D)

    @pl.when(h == 0)
    def _():
        o_acc[...] = jnp.zeros_like(o_acc)

    o_acc[...] += contrib

    @pl.when(h == num_heads - 1)
    def _():
        out_ref[0] = (o_acc[...] + bo_ref[...]).astype(out_ref.dtype)


def _mha_kernel_attn(x_ref, wq_ref, wk_ref, wv_ref, wo_ref,
                     bq_ref, bk_ref, bv_ref, bo_ref,
                     out_ref, attn_ref, k_scr, v_scr, o_acc,
                     *, num_heads, q_tile, inv_sqrt_d):
    _mha_step(x_ref, wq_ref, wk_ref, wv_ref, wo_ref, bq_ref, bk_ref, bv_ref,
              bo_ref, out_ref, attn_ref, k_scr, v_scr, o_acc,
              num_heads=num_heads, q_tile=q_tile, inv_sqrt_d=inv_sqrt_d)


def _mha_kernel_noattn(x_ref, wq_ref, wk_ref, wv_ref, wo_ref,
                       bq_ref, bk_ref, bv_ref, bo_ref,
                       out_ref, k_scr, v_scr, o_acc,
                       *, num_heads, q_tile, inv_sqrt_d):
    _mha_step(x_ref, wq_ref, wk_ref, wv_ref, wo_ref, bq_ref, bk_ref, bv_ref,
              bo_ref, out_ref, None, k_scr, v_scr, o_acc,
              num_heads=num_heads, q_tile=q_tile, inv_sqrt_d=inv_sqrt_d)


def _choose_q_tile(L, D, out_itemsize, attn_itemsize):
    """Largest lane-friendly query tile whose per-step working set fits a VMEM budget."""
    def vmem_bytes(tq):
        x_blk = 2 * L * D * 2                       # full-seq x block, double-buffered bf16
        w_blk = 2 * 4 * D * D * 2                   # wq+wk+wv+wo (head-major), bf16, 2 buffers
        b_blk = 2 * 4 * D * 4                       # biases, f32
        out_blk = 2 * tq * D * out_itemsize
        attn_blk = 2 * tq * L * attn_itemsize
        scr = 2 * L * D * 2 + tq * D * 4            # K/V cache (bf16) + o accumulator (f32)
        return x_blk + w_blk + b_blk + out_blk + attn_blk + scr

    budget = 48 * 1024 * 1024                       # fits v7x 64 MiB with headroom
    for tq in (512, 256, 128):
        if L % tq == 0 and vmem_bytes(tq) <= budget:
            return tq, vmem_bytes(tq)
    if L % 128 == 0:
        return 128, vmem_bytes(128)
    # TODO(synk): pad L to a multiple of 128 (with key masking) instead of TQ=L
    # for large, non-128-aligned sequence lengths.
    return L, vmem_bytes(L)


def multihead_attention(x, params, num_heads, return_attention=True,
                        attn_dtype=jnp.bfloat16):
    """x: (B, L, D) or (L, D) float32. params: qw,kw,vw,ow (D,D) PyTorch (out,in); *b (1,D)."""
    if x.ndim == 2:
        x = x[None]
    B, L, D = x.shape
    head_dim = D // num_heads
    H = num_heads
    out_dtype = x.dtype
    cdt = jnp.bfloat16

    TQ, vmem_est = _choose_q_tile(
        L, D, np.dtype(out_dtype).itemsize,
        np.dtype(attn_dtype).itemsize if return_attention else 0)
    n_q = L // TQ

    # Head-major weight layout; PyTorch weights are (out, in) -> transpose to (in, out) first.
    def head_major_in_out(w):                       # (D_out, D_in) -> (H, D_in, hd)
        return jnp.transpose(w.T.reshape(D, H, head_dim), (1, 0, 2)).astype(cdt)

    wq = head_major_in_out(params["qw"])
    wk = head_major_in_out(params["kw"])
    wv = head_major_in_out(params["vw"])
    wo = params["ow"].T.reshape(H, head_dim, D).astype(cdt)            # (H, hd, D)
    bq = params["qb"].reshape(H, 1, head_dim).astype(jnp.float32)
    bk = params["kb"].reshape(H, 1, head_dim).astype(jnp.float32)
    bv = params["vb"].reshape(H, 1, head_dim).astype(jnp.float32)
    bo = params["ob"].astype(jnp.float32)                              # (1, D)
    x_c = x.astype(cdt)

    const3 = lambda b, qi, h: (0, 0, 0)
    const2 = lambda b, qi, h: (0, 0)

    in_specs = [
        pl.BlockSpec((1, L, D), lambda b, qi, h: (b, 0, 0)),           # x (full sequence)
        pl.BlockSpec((H, D, head_dim), const3),                        # Wq (head-major)
        pl.BlockSpec((H, D, head_dim), const3),                        # Wk
        pl.BlockSpec((H, D, head_dim), const3),                        # Wv
        pl.BlockSpec((H, head_dim, D), const3),                        # Wo (head-major)
        pl.BlockSpec((H, 1, head_dim), const3),                        # bq
        pl.BlockSpec((H, 1, head_dim), const3),                        # bk
        pl.BlockSpec((H, 1, head_dim), const3),                        # bv
        pl.BlockSpec((1, D), const2),                                  # bo
    ]
    scratch = [pltpu.VMEM((H, L, head_dim), cdt),                      # K cache
               pltpu.VMEM((H, L, head_dim), cdt),                      # V cache
               pltpu.VMEM((TQ, D), jnp.float32)]                       # output accumulator
    out_spec = pl.BlockSpec((1, TQ, D), lambda b, qi, h: (b, qi, 0))

    kw = dict(num_heads=H, q_tile=TQ, inv_sqrt_d=1.0 / math.sqrt(head_dim))
    compiler_params = pltpu.CompilerParams(
        dimension_semantics=("parallel", "arbitrary", "arbitrary"),
        vmem_limit_bytes=int(min(max(1.5 * vmem_est, 32 * 1024 * 1024),
                                 96 * 1024 * 1024)))

    if return_attention:
        out, attn = pl.pallas_call(
            functools.partial(_mha_kernel_attn, **kw),
            out_shape=(jax.ShapeDtypeStruct((B, L, D), out_dtype),
                       jax.ShapeDtypeStruct((B, H, L, L), attn_dtype)),
            grid_spec=pltpu.PrefetchScalarGridSpec(
                num_scalar_prefetch=0, grid=(B, n_q, H),
                in_specs=in_specs,
                out_specs=[out_spec,
                           pl.BlockSpec((1, 1, TQ, L),
                                        lambda b, qi, h: (b, h, qi, 0))],
                scratch_shapes=scratch),
            compiler_params=compiler_params,
        )(x_c, wq, wk, wv, wo, bq, bk, bv, bo)
        return out, attn

    out = pl.pallas_call(
        functools.partial(_mha_kernel_noattn, **kw),
        out_shape=jax.ShapeDtypeStruct((B, L, D), out_dtype),
        grid_spec=pltpu.PrefetchScalarGridSpec(
            num_scalar_prefetch=0, grid=(B, n_q, H),
            in_specs=in_specs,
            out_specs=out_spec,
            scratch_shapes=scratch),
        compiler_params=compiler_params,
    )(x_c, wq, wk, wv, wo, bq, bk, bv, bo)
    return out


def init_params(key, embed_dim):
    """Deterministic xavier_uniform weights (PyTorch (out, in) layout), zero biases."""
    bound = math.sqrt(6.0 / (embed_dim + embed_dim))
    keys = jax.random.split(key, 4)
    params = {}
    for name, k in zip(("qw", "kw", "vw", "ow"), keys):
        params[name] = jax.random.uniform(
            k, (embed_dim, embed_dim), dtype=jnp.float32, minval=-bound, maxval=bound)
    for name in ("qb", "kb", "vb", "ob"):
        params[name] = jnp.zeros((1, embed_dim), dtype=jnp.float32)
    return params


def reference_mha(x, params, num_heads):
    """Plain-JAX f32 reference mirroring the PyTorch forward."""
    B, L, D = x.shape
    hd = D // num_heads
    q = x @ params["qw"].T + params["qb"][0]
    k = x @ params["kw"].T + params["kb"][0]
    v = x @ params["vw"].T + params["vb"][0]
    q = q.reshape(B, L, num_heads, hd).transpose(0, 2, 1, 3)
    k = k.reshape(B, L, num_heads, hd).transpose(0, 2, 1, 3)
    v = v.reshape(B, L, num_heads, hd).transpose(0, 2, 1, 3)
    s = jnp.einsum("bhqd,bhkd->bhqk", q / math.sqrt(hd), k)
    attn = jax.nn.softmax(s, axis=-1)
    out = jnp.einsum("bhqk,bhkd->bhqd", attn, v)
    out = out.transpose(0, 2, 1, 3).reshape(B, L, D)
    out = out @ params["ow"].T + params["ob"][0]
    return out, attn


if __name__ == "__main__":
    B, L, D, H = 2, 8, 32, 4

    key = jax.random.PRNGKey(0)
    kx, kp = jax.random.split(key)
    x = jax.random.normal(kx, (B, L, D), dtype=jnp.float32)
    params = init_params(kp, D)

    out, attn = multihead_attention(x, params, H, return_attention=True)
    out = jax.block_until_ready(out)
    attn = jax.block_until_ready(attn)

    ref_out, ref_attn = reference_mha(x, params, H)

    # bf16 MXU operands + bf16 attn output + approx reciprocal -> loosened tolerance.
    assert np.allclose(np.asarray(out.astype(jnp.float32)), np.asarray(ref_out),
                       atol=5e-2, rtol=5e-2)
    assert np.allclose(np.asarray(attn.astype(jnp.float32)), np.asarray(ref_attn),
                       atol=3e-2, rtol=3e-2)

    # Variant that skips the attention-probability writeback entirely.
    out_only = multihead_attention(x, params, H, return_attention=False)
    out_only = jax.block_until_ready(out_only)
    assert np.allclose(np.asarray(out_only.astype(jnp.float32)), np.asarray(ref_out),
                       atol=5e-2, rtol=5e-2)

    print("KERNEL_OK")
</pallas_src>

<mosaic_0001>
module attributes {stable_mosaic.version = 11 : i64} {
  func.func @_mha_kernel_attn(%arg0: i32, %arg1: i32, %arg2: i32, %arg3: memref<1x8x32xbf16, #tpu.memory_space<vmem>>, %arg4: memref<4x32x8xbf16, #tpu.memory_space<vmem>>, %arg5: memref<4x32x8xbf16, #tpu.memory_space<vmem>>, %arg6: memref<4x32x8xbf16, #tpu.memory_space<vmem>>, %arg7: memref<4x8x32xbf16, #tpu.memory_space<vmem>>, %arg8: memref<4x1x8xf32, #tpu.memory_space<vmem>>, %arg9: memref<4x1x8xf32, #tpu.memory_space<vmem>>, %arg10: memref<4x1x8xf32, #tpu.memory_space<vmem>>, %arg11: memref<1x32xf32, #tpu.memory_space<vmem>>, %arg12: memref<1x8x32xf32, #tpu.memory_space<vmem>>, %arg13: memref<1x1x8x8xbf16, #tpu.memory_space<vmem>>, %arg14: memref<4x8x8xbf16, #tpu.memory_space<vmem>>, %arg15: memref<4x8x8xbf16, #tpu.memory_space<vmem>>, %arg16: memref<8x32xf32, #tpu.memory_space<vmem>>) attributes {dimension_semantics = [#tpu.dimension_semantics<parallel>, #tpu.dimension_semantics<arbitrary>, #tpu.dimension_semantics<arbitrary>], iteration_bounds = array<i64: 2, 1, 4>, scalar_prefetch = 0 : i64, scratch_operands = 3 : i64, tpu.core_type = #tpu.core_type<tc>, window_params = [{transform_indices = @transform_0, window_bounds = array<i64: 1, 8, 32>}, {pipeline_mode = #tpu.pipeline_mode<synchronous>, transform_indices = @transform_1, window_bounds = array<i64: 4, 32, 8>}, {pipeline_mode = #tpu.pipeline_mode<synchronous>, transform_indices = @transform_2, window_bounds = array<i64: 4, 32, 8>}, {pipeline_mode = #tpu.pipeline_mode<synchronous>, transform_indices = @transform_3, window_bounds = array<i64: 4, 32, 8>}, {pipeline_mode = #tpu.pipeline_mode<synchronous>, transform_indices = @transform_4, window_bounds = array<i64: 4, 8, 32>}, {pipeline_mode = #tpu.pipeline_mode<synchronous>, transform_indices = @transform_5, window_bounds = array<i64: 4, 1, 8>}, {pipeline_mode = #tpu.pipeline_mode<synchronous>, transform_indices = @transform_6, window_bounds = array<i64: 4, 1, 8>}, {pipeline_mode = #tpu.pipeline_mode<synchronous>, transform_indices = @transform_7, window_bounds = array<i64: 4, 1, 8>}, {pipeline_mode = #tpu.pipeline_mode<synchronous>, transform_indices = @transform_8, window_bounds = array<i64: 1, 32>}, {transform_indices = @transform_9, window_bounds = array<i64: 1, 8, 32>}, {transform_indices = @transform_10, window_bounds = array<i64: 1, 1, 8, 8>}]} {
    %c0_i32 = arith.constant 0 : i32
    %0 = arith.cmpi eq, %arg1, %c0_i32 : i32
    %1 = arith.extui %0 : i1 to i32
    %c0_i32_0 = arith.constant 0 : i32
    %2 = arith.cmpi ne, %1, %c0_i32_0 : i32
    scf.if %2 {
      %c0_29 = arith.constant 0 : index
      %c0_30 = arith.constant 0 : index
      %c0_31 = arith.constant 0 : index
      %57 = vector.load %arg3[%c0_29, %c0_30, %c0_31] : memref<1x8x32xbf16, #tpu.memory_space<vmem>>, vector<1x8x32xbf16>
      %58 = vector.shape_cast %57 : vector<1x8x32xbf16> to vector<8x32xbf16>
      %59 = arith.index_cast %arg2 : i32 to index
      %c0_32 = arith.constant 0 : index
      %c0_33 = arith.constant 0 : index
      %60 = vector.load %arg5[%59, %c0_32, %c0_33] : memref<4x32x8xbf16, #tpu.memory_space<vmem>>, vector<1x32x8xbf16>
      %61 = vector.shape_cast %60 : vector<1x32x8xbf16> to vector<32x8xbf16>
      %cst_34 = arith.constant dense<0.000000e+00> : vector<8x8xf32>
      %62 = tpu.matmul %58, %61, %cst_34 {dimension_numbers = #tpu.dot_dimension_numbers<[1], [0], [0], [1], [0, 0, 1, 1], [], []>} : vector<8x32xbf16>, vector<32x8xbf16>, vector<8x8xf32> -> vector<8x8xf32>
      %63 = arith.index_cast %arg2 : i32 to index
      %c0_35 = arith.constant 0 : index
      %c0_36 = arith.constant 0 : index
      %64 = vector.load %arg9[%63, %c0_35, %c0_36] : memref<4x1x8xf32, #tpu.memory_space<vmem>>, vector<1x1x8xf32>
      %65 = vector.shape_cast %64 : vector<1x1x8xf32> to vector<1x8xf32>
      %66 = vector.broadcast %65 : vector<1x8xf32> to vector<8x8xf32>
      %67 = arith.addf %62, %66 : vector<8x8xf32>
      %68 = arith.index_cast %arg2 : i32 to index
      %c0_37 = arith.constant 0 : index
      %c0_38 = arith.constant 0 : index
      %69 = vector.load %arg6[%68, %c0_37, %c0_38] : memref<4x32x8xbf16, #tpu.memory_space<vmem>>, vector<1x32x8xbf16>
      %70 = vector.shape_cast %69 : vector<1x32x8xbf16> to vector<32x8xbf16>
      %cst_39 = arith.constant dense<0.000000e+00> : vector<8x8xf32>
      %71 = tpu.matmul %58, %70, %cst_39 {dimension_numbers = #tpu.dot_dimension_numbers<[1], [0], [0], [1], [0, 0, 1, 1], [], []>} : vector<8x32xbf16>, vector<32x8xbf16>, vector<8x8xf32> -> vector<8x8xf32>
      %72 = arith.index_cast %arg2 : i32 to index
      %c0_40 = arith.constant 0 : index
      %c0_41 = arith.constant 0 : index
      %73 = vector.load %arg10[%72, %c0_40, %c0_41] : memref<4x1x8xf32, #tpu.memory_space<vmem>>, vector<1x1x8xf32>
      %74 = vector.shape_cast %73 : vector<1x1x8xf32> to vector<1x8xf32>
      %75 = vector.broadcast %74 : vector<1x8xf32> to vector<8x8xf32>
      %76 = arith.addf %71, %75 : vector<8x8xf32>
      %77 = arith.truncf %67 : vector<8x8xf32> to vector<8x8xbf16>
      %78 = arith.index_cast %arg2 : i32 to index
      %c0_42 = arith.constant 0 : index
      %c0_43 = arith.constant 0 : index
      %79 = vector.load %arg14[%78, %c0_42, %c0_43] : memref<4x8x8xbf16, #tpu.memory_space<vmem>>, vector<1x8x8xbf16>
      %80 = vector.shape_cast %79 : vector<1x8x8xbf16> to vector<8x8xbf16>
      %81 = vector.shape_cast %77 : vector<8x8xbf16> to vector<1x8x8xbf16>
      tpu.vector_store %arg14[%78, %c0_42, %c0_43], %81 {strides = array<i32>} : memref<4x8x8xbf16, #tpu.memory_space<vmem>>, vector<1x8x8xbf16>,
      %82 = arith.truncf %76 : vector<8x8xf32> to vector<8x8xbf16>
      %83 = arith.index_cast %arg2 : i32 to index
      %c0_44 = arith.constant 0 : index
      %c0_45 = arith.constant 0 : index
      %84 = vector.load %arg15[%83, %c0_44, %c0_45] : memref<4x8x8xbf16, #tpu.memory_space<vmem>>, vector<1x8x8xbf16>
      %85 = vector.shape_cast %84 : vector<1x8x8xbf16> to vector<8x8xbf16>
      %86 = vector.shape_cast %82 : vector<8x8xbf16> to vector<1x8x8xbf16>
      tpu.vector_store %arg15[%83, %c0_44, %c0_45], %86 {strides = array<i32>} : memref<4x8x8xbf16, #tpu.memory_space<vmem>>, vector<1x8x8xbf16>,
    } else {
    }
    %c8_i32 = arith.constant 8 : i32
    %3 = arith.muli %arg1, %c8_i32 : i32
    %4 = tpu.assume_multiple %3, 8 : i32
    %c0 = arith.constant 0 : index
    %5 = arith.index_cast %4 : i32 to index
    %c0_1 = arith.constant 0 : index
    %6 = vector.load %arg3[%c0, %5, %c0_1] : memref<1x8x32xbf16, #tpu.memory_space<vmem>>, vector<1x8x32xbf16>
    %7 = vector.shape_cast %6 : vector<1x8x32xbf16> to vector<8x32xbf16>
    %8 = arith.index_cast %arg2 : i32 to index
    %c0_2 = arith.constant 0 : index
    %c0_3 = arith.constant 0 : index
    %9 = vector.load %arg4[%8, %c0_2, %c0_3] : memref<4x32x8xbf16, #tpu.memory_space<vmem>>, vector<1x32x8xbf16>
    %10 = vector.shape_cast %9 : vector<1x32x8xbf16> to vector<32x8xbf16>
    %cst = arith.constant dense<0.000000e+00> : vector<8x8xf32>
    %11 = tpu.matmul %7, %10, %cst {dimension_numbers = #tpu.dot_dimension_numbers<[1], [0], [0], [1], [0, 0, 1, 1], [], []>} : vector<8x32xbf16>, vector<32x8xbf16>, vector<8x8xf32> -> vector<8x8xf32>
    %12 = arith.index_cast %arg2 : i32 to index
    %c0_4 = arith.constant 0 : index
    %c0_5 = arith.constant 0 : index
    %13 = vector.load %arg8[%12, %c0_4, %c0_5] : memref<4x1x8xf32, #tpu.memory_space<vmem>>, vector<1x1x8xf32>
    %14 = vector.shape_cast %13 : vector<1x1x8xf32> to vector<1x8xf32>
    %15 = vector.broadcast %14 : vector<1x8xf32> to vector<8x8xf32>
    %16 = arith.addf %11, %15 : vector<8x8xf32>
    %cst_6 = arith.constant 0.353553385 : f32
    %17 = vector.broadcast %cst_6 : f32 to vector<8x8xf32>
    %18 = arith.mulf %16, %17 : vector<8x8xf32>
    %19 = arith.truncf %18 : vector<8x8xf32> to vector<8x8xbf16>
    %20 = arith.index_cast %arg2 : i32 to index
    %c0_7 = arith.constant 0 : index
    %c0_8 = arith.constant 0 : index
    %21 = vector.load %arg14[%20, %c0_7, %c0_8] : memref<4x8x8xbf16, #tpu.memory_space<vmem>>, vector<1x8x8xbf16>
    %22 = vector.shape_cast %21 : vector<1x8x8xbf16> to vector<8x8xbf16>
    %cst_9 = arith.constant dense<0.000000e+00> : vector<8x8xf32>
    %23 = tpu.matmul %19, %22, %cst_9 {dimension_numbers = #tpu.dot_dimension_numbers<[1], [1], [0], [0], [0, 0, 1, 0], [], []>} : vector<8x8xbf16>, vector<8x8xbf16>, vector<8x8xf32> -> vector<8x8xf32>
    %cst_10 = arith.constant dense<0xFF800000> : vector<8xf32>
    %24 = vector.multi_reduction <maximumf>, %23, %cst_10 [1] : vector<8x8xf32> to vector<8xf32>
    %25 = vector.shape_cast %24 : vector<8xf32> to vector<8x1xf32>
    %26 = vector.broadcast %25 : vector<8x1xf32> to vector<8x8xf32>
    %27 = arith.subf %23, %26 : vector<8x8xf32>
    %28 = math.exp %27 : vector<8x8xf32>
    %cst_11 = arith.constant dense<0.000000e+00> : vector<8xf32>
    %29 = vector.multi_reduction <add>, %28, %cst_11 [1] : vector<8x8xf32> to vector<8xf32>
    %30 = vector.shape_cast %29 : vector<8xf32> to vector<8x1xf32>
    %31 = tpu.reciprocal %30 {approx = true} : vector<8x1xf32> -> vector<8x1xf32>
    %32 = vector.broadcast %31 : vector<8x1xf32> to vector<8x8xf32>
    %33 = arith.mulf %28, %32 : vector<8x8xf32>
    %34 = arith.truncf %33 : vector<8x8xf32> to vector<8x8xbf16>
    %35 = arith.truncf %33 : vector<8x8xf32> to vector<8x8xbf16>
    %c0_12 = arith.constant 0 : index
    %c0_13 = arith.constant 0 : index
    %c0_14 = arith.constant 0 : index
    %c0_15 = arith.constant 0 : index
    %36 = vector.load %arg13[%c0_12, %c0_13, %c0_14, %c0_15] : memref<1x1x8x8xbf16, #tpu.memory_space<vmem>>, vector<1x1x8x8xbf16>
    %37 = vector.shape_cast %36 : vector<1x1x8x8xbf16> to vector<8x8xbf16>
    %38 = vector.shape_cast %35 : vector<8x8xbf16> to vector<1x1x8x8xbf16>
    tpu.vector_store %arg13[%c0_12, %c0_13, %c0_14, %c0_15], %38 {strides = array<i32>} : memref<1x1x8x8xbf16, #tpu.memory_space<vmem>>, vector<1x1x8x8xbf16>,
    %39 = arith.index_cast %arg2 : i32 to index
    %c0_16 = arith.constant 0 : index
    %c0_17 = arith.constant 0 : index
    %40 = vector.load %arg15[%39, %c0_16, %c0_17] : memref<4x8x8xbf16, #tpu.memory_space<vmem>>, vector<1x8x8xbf16>
    %41 = vector.shape_cast %40 : vector<1x8x8xbf16> to vector<8x8xbf16>
    %cst_18 = arith.constant dense<0.000000e+00> : vector<8x8xf32>
    %42 = tpu.matmul %34, %41, %cst_18 {dimension_numbers = #tpu.dot_dimension_numbers<[1], [0], [0], [1], [0, 0, 1, 1], [], []>} : vector<8x8xbf16>, vector<8x8xbf16>, vector<8x8xf32> -> vector<8x8xf32>
    %43 = arith.truncf %42 : vector<8x8xf32> to vector<8x8xbf16>
    %44 = arith.index_cast %arg2 : i32 to index
    %c0_19 = arith.constant 0 : index
    %c0_20 = arith.constant 0 : index
    %45 = vector.load %arg7[%44, %c0_19, %c0_20] : memref<4x8x32xbf16, #tpu.memory_space<vmem>>, vector<1x8x32xbf16>
    %46 = vector.shape_cast %45 : vector<1x8x32xbf16> to vector<8x32xbf16>
    %cst_21 = arith.constant dense<0.000000e+00> : vector<8x32xf32>
    %47 = tpu.matmul %43, %46, %cst_21 {dimension_numbers = #tpu.dot_dimension_numbers<[1], [0], [0], [1], [0, 0, 1, 1], [], []>} : vector<8x8xbf16>, vector<8x32xbf16>, vector<8x32xf32> -> vector<8x32xf32>
    %c0_i32_22 = arith.constant 0 : i32
    %48 = arith.cmpi eq, %arg2, %c0_i32_22 : i32
    %49 = arith.extui %48 : i1 to i32
    %c0_i32_23 = arith.constant 0 : i32
    %50 = arith.cmpi ne, %49, %c0_i32_23 : i32
    scf.if %50 {
      %cst_29 = arith.constant 0.000000e+00 : f32
      %57 = vector.broadcast %cst_29 : f32 to vector<8x32xf32>
      %c0_30 = arith.constant 0 : index
      %c0_31 = arith.constant 0 : index
      %58 = vector.load %arg16[%c0_30, %c0_31] : memref<8x32xf32, #tpu.memory_space<vmem>>, vector<8x32xf32>
      tpu.vector_store %arg16[%c0_30, %c0_31], %57 {strides = array<i32>} : memref<8x32xf32, #tpu.memory_space<vmem>>, vector<8x32xf32>,
    } else {
    }
    %c0_24 = arith.constant 0 : index
    %c0_25 = arith.constant 0 : index
    %51 = vector.load %arg16[%c0_24, %c0_25] : memref<8x32xf32, #tpu.memory_space<vmem>>, vector<8x32xf32>
    %52 = arith.addf %51, %47 : vector<8x32xf32>
    %c0_26 = arith.constant 0 : index
    %c0_27 = arith.constant 0 : index
    %53 = vector.load %arg16[%c0_26, %c0_27] : memref<8x32xf32, #tpu.memory_space<vmem>>, vector<8x32xf32>
    tpu.vector_store %arg16[%c0_26, %c0_27], %52 {strides = array<i32>} : memref<8x32xf32, #tpu.memory_space<vmem>>, vector<8x32xf32>,
    %c3_i32 = arith.constant 3 : i32
    %54 = arith.cmpi eq, %arg2, %c3_i32 : i32
    %55 = arith.extui %54 : i1 to i32
    %c0_i32_28 = arith.constant 0 : i32
    %56 = arith.cmpi ne, %55, %c0_i32_28 : i32
    scf.if %56 {
      %c0_29 = arith.constant 0 : index
      %c0_30 = arith.constant 0 : index
      %57 = vector.load %arg16[%c0_29, %c0_30] : memref<8x32xf32, #tpu.memory_space<vmem>>, vector<8x32xf32>
      %c0_31 = arith.constant 0 : index
      %c0_32 = arith.constant 0 : index
      %58 = vector.load %arg11[%c0_31, %c0_32] : memref<1x32xf32, #tpu.memory_space<vmem>>, vector<1x32xf32>
      %59 = vector.broadcast %58 : vector<1x32xf32> to vector<8x32xf32>
      %60 = arith.addf %57, %59 : vector<8x32xf32>
      %c0_33 = arith.constant 0 : index
      %c0_34 = arith.constant 0 : index
      %c0_35 = arith.constant 0 : index
      %61 = vector.load %arg12[%c0_33, %c0_34, %c0_35] : memref<1x8x32xf32, #tpu.memory_space<vmem>>, vector<1x8x32xf32>
      %62 = vector.shape_cast %61 : vector<1x8x32xf32> to vector<8x32xf32>
      %63 = vector.shape_cast %60 : vector<8x32xf32> to vector<1x8x32xf32>
      tpu.vector_store %arg12[%c0_33, %c0_34, %c0_35], %63 {strides = array<i32>} : memref<1x8x32xf32, #tpu.memory_space<vmem>>, vector<1x8x32xf32>,
    } else {
    }
    return
  }
  func.func @transform_0(%arg0: i32, %arg1: i32, %arg2: i32) -> (i32, i32, i32) {
    %c0_i32 = arith.constant 0 : i32
    %c0_i32_0 = arith.constant 0 : i32
    %c0_i32_1 = arith.constant 0 : i32
    return %arg0, %c0_i32, %c0_i32_0 : i32, i32, i32
  }
  func.func @transform_1(%arg0: i32, %arg1: i32, %arg2: i32) -> (i32, i32, i32) {
    %c0_i32 = arith.constant 0 : i32
    %c0_i32_0 = arith.constant 0 : i32
    %c0_i32_1 = arith.constant 0 : i32
    %c0_i32_2 = arith.constant 0 : i32
    return %c0_i32, %c0_i32_0, %c0_i32_1 : i32, i32, i32
  }
  func.func @transform_2(%arg0: i32, %arg1: i32, %arg2: i32) -> (i32, i32, i32) {
    %c0_i32 = arith.constant 0 : i32
    %c0_i32_0 = arith.constant 0 : i32
    %c0_i32_1 = arith.constant 0 : i32
    %c0_i32_2 = arith.constant 0 : i32
    return %c0_i32, %c0_i32_0, %c0_i32_1 : i32, i32, i32
  }
  func.func @transform_3(%arg0: i32, %arg1: i32, %arg2: i32) -> (i32, i32, i32) {
    %c0_i32 = arith.constant 0 : i32
    %c0_i32_0 = arith.constant 0 : i32
    %c0_i32_1 = arith.constant 0 : i32
    %c0_i32_2 = arith.constant 0 : i32
    return %c0_i32, %c0_i32_0, %c0_i32_1 : i32, i32, i32
  }
  func.func @transform_4(%arg0: i32, %arg1: i32, %arg2: i32) -> (i32, i32, i32) {
    %c0_i32 = arith.constant 0 : i32
    %c0_i32_0 = arith.constant 0 : i32
    %c0_i32_1 = arith.constant 0 : i32
    %c0_i32_2 = arith.constant 0 : i32
    return %c0_i32, %c0_i32_0, %c0_i32_1 : i32, i32, i32
  }
  func.func @transform_5(%arg0: i32, %arg1: i32, %arg2: i32) -> (i32, i32, i32) {
    %c0_i32 = arith.constant 0 : i32
    %c0_i32_0 = arith.constant 0 : i32
    %c0_i32_1 = arith.constant 0 : i32
    %c0_i32_2 = arith.constant 0 : i32
    return %c0_i32, %c0_i32_0, %c0_i32_1 : i32, i32, i32
  }
  func.func @transform_6(%arg0: i32, %arg1: i32, %arg2: i32) -> (i32, i32, i32) {
    %c0_i32 = arith.constant 0 : i32
    %c0_i32_0 = arith.constant 0 : i32
    %c0_i32_1 = arith.constant 0 : i32
    %c0_i32_2 = arith.constant 0 : i32
    return %c0_i32, %c0_i32_0, %c0_i32_1 : i32, i32, i32
  }
  func.func @transform_7(%arg0: i32, %arg1: i32, %arg2: i32) -> (i32, i32, i32) {
    %c0_i32 = arith.constant 0 : i32
    %c0_i32_0 = arith.constant 0 : i32
    %c0_i32_1 = arith.constant 0 : i32
    %c0_i32_2 = arith.constant 0 : i32
    return %c0_i32, %c0_i32_0, %c0_i32_1 : i32, i32, i32
  }
  func.func @transform_8(%arg0: i32, %arg1: i32, %arg2: i32) -> (i32, i32) {
    %c0_i32 = arith.constant 0 : i32
    %c0_i32_0 = arith.constant 0 : i32
    %c0_i32_1 = arith.constant 0 : i32
    return %c0_i32, %c0_i32_0 : i32, i32
  }
  func.func @transform_9(%arg0: i32, %arg1: i32, %arg2: i32) -> (i32, i32, i32) {
    %c0_i32 = arith.constant 0 : i32
    %c0_i32_0 = arith.constant 0 : i32
    return %arg0, %arg1, %c0_i32 : i32, i32, i32
  }
  func.func @transform_10(%arg0: i32, %arg1: i32, %arg2: i32) -> (i32, i32, i32, i32) {
    %c0_i32 = arith.constant 0 : i32
    %c0_i32_0 = arith.constant 0 : i32
    return %arg0, %arg2, %arg1, %c0_i32 : i32, i32, i32, i32
  }
}

</mosaic_0001>

<bundles_post_ra>
// kernel: tpu_custom_call.1
= control target key start
LH: loop header
LB: loop body
LE: loop exit
PB: predicated region body
PF: predicated region fallthrough
CT: control target
= control target key end

     0   :  { %s1693_s0 = inlined_call_operand.vmem [shape: bf16[2,8,32], index: 0, kind: input, shape index: {}]   ;;  %s1694_s1 = inlined_call_operand.vmem [shape: bf16[4,32,8], index: 1, kind: input, shape index: {}]   ;;  %s1695_s2 = inlined_call_operand.vmem [shape: bf16[4,32,8], index: 2, kind: input, shape index: {}]   ;;  %s1696_s3 = inlined_call_operand.vmem [shape: bf16[4,32,8], index: 3, kind: input, shape index: {}]   ;;  %s1697_s4 = inlined_call_operand.vmem [shape: bf16[4,8,32], index: 4, kind: input, shape index: {}]   ;;  %s1698_s5 = inlined_call_operand.vmem [shape: f32[4,1,8], index: 5, kind: input, shape index: {}]   ;;  %s1699_s6 = inlined_call_operand.vmem [shape: f32[4,1,8], index: 6, kind: input, shape index: {}]   ;;  %s1700_s7 = inlined_call_operand.vmem [shape: f32[4,1,8], index: 7, kind: input, shape index: {}]   ;;  %s1701_s8 = inlined_call_operand.vmem [shape: f32[1,32], index: 8, kind: input, shape index: {}]   ;;  %s1702_s9 = inlined_call_operand.hbm [shape: f32[2,8,32], index: 9, kind: output, shape index: {0}]   ;;  %s1703_s10 = inlined_call_operand.hbm [shape: bf16[2,4,8,8], index: 10, kind: output, shape index: {1}]  }
   0x1   :  { %1716 = sst [smem:[#allocation18_spill]] %s1693_s0 }
   0x2   :  { %1717 = sst [smem:[#allocation19_spill]] %s1694_s1 }
   0x3   :  { %1718 = sst [smem:[#allocation20_spill]] %s1695_s2 }
   0x4   :  { %1719 = sst [smem:[#allocation21_spill]] %s1696_s3 }
   0x5   :  { %1720 = sst [smem:[#allocation22_spill]] %s1697_s4 }
   0x6   :  { %1721 = sst [smem:[#allocation23_spill]] %s1698_s5 }
   0x7   :  { %1722 = sst [smem:[#allocation24_spill]] %s1699_s6 }
   0x8   :  { %1723 = sst [smem:[#allocation25_spill]] %s1700_s7 }
   0x9   :  { %1724 = sst [smem:[#allocation26_spill]] %s1701_s8 }
   0xa   :  { %1725 = sst [smem:[#allocation27_spill]] %s1702_s9 }
   0xb   :  { %1726 = sst [smem:[#allocation28_spill]] %s1703_s10 }
   0xc   :  { %16 = vsyncpa [#allocation6], 0 }
   0xd   :  { %18 = vsyncpa [#allocation6 + $0x1], 0 }
   0xe   :  { %19 = vsyncpa [#allocation8], 0 }
   0xf   :  { %21 = vsyncpa [#allocation8 + $0x1], 0  ;;  %s1398_s13 = smov 0   ;;  %s1400_s14 = smov 0  }
  0x10   :  { %s1402_s15 = smov 0   ;;  %s1404_s16 = smov 0  }
  0x11   :  { %s1406_s17 = smov 0   ;;  %s1408_s18 = smov 0  }
  0x12   :  { %s1410_s19 = smov 0   ;;  %s1412_s20 = smov 0  }
  0x13   :  { %s1414_s21 = smov 0   ;;  %s1416_s22 = smov 0  }
  0x14   :  { %s1418_s23 = smov 0  }
  0x15 LB: > { %1727 = sst [smem:[#allocation11_spill]] %s1308_s16  ;;  %s974_s24 = sadd.s32 4294967295, %s1336_s23   ;;  %s1336_s23 = sphi %s1418_s23, %s27_s23   ;;  %s1332_s22 = sphi %s1416_s22, %s1762_s22   ;;  %s1328_s21 = sphi %s1414_s21, %s1769_s21   ;;  %s1324_s20 = sphi %s1412_s20, %s1760_s20   ;;  %s1320_s19 = sphi %s1410_s19, %s1759_s19   ;;  %s1316_s18 = sphi %s1408_s18, %s1768_s18   ;;  %s1312_s17 = sphi %s1406_s17, %s1767_s17   ;;  %s1308_s16 = sphi %s1404_s16, %s1766_s16   ;;  %s1304_s15 = sphi %s1402_s15, %s1765_s15   ;;  %s1300_s14 = sphi %s1400_s14, %s1764_s14   ;;  %s1296_s13 = sphi %s1398_s13, %s1763_s13  }
  0x16   : > { %1728 = sst [smem:[#allocation12_spill]] %s1328_s21  ;;  %s975_s25 = sadd.s32 4294967294, %s1336_s23  }
  0x17   : > { %1729 = sst [smem:[#allocation13_spill]] %s1332_s22  ;;  %s39_s26 = sadd.s32 1, %s1328_s21 }
  0x18   : > { %s46_s27 = sadd.s32 1, %s1332_s22  ;;  %p40_p0 = scmp.ge.s32.totalorder %s39_s26, 4 }
  0x19   : > { %s249_s28 = sadd.s32 1, %s1316_s18  ;;  %p259_p1 = scmp.ne.s32.totalorder %s1316_s18, %s1312_s17 }
  0x1a   : > { %p1460_p2 = scmp.eq.s32.totalorder %s974_s24, 7  ;;  %s1771_s26 = smov (%p40_p0, %s39_s26), 0 }
  0x1b   : > { %1731 = sst [smem:[#allocation14_spill]] %s1771_s26  ;;  %s1773_s27 = smov (!%p40_p0, %s46_s27), %s1332_s22 }
  0x1c   : > { %p1469_p3 = por %p1460_p2, %p259_p1  ;;  %p265_p4 = scmp.ne.s32.totalorder %s1312_s17, %s1308_s16 }
  0x1d   : > { %p48_p5 = scmp.ge.s32.totalorder %s1773_s27, 2  ;;  %p1475_p6 = scmp.eq.s32.totalorder %s975_s25, 7 }
  0x1e   : > { %s1732_s30 = scalar_select %p1469_p3, 1, 0 }
  0x1f   : > { %s273_s12 = ssub.s32 %s1328_s21, %s1771_s26  ;;  %s279_s24 = sadd.s32 1, %s1304_s15 }
  0x20   : > { %1733 = sst [smem:[#allocation15_spill]] %s1732_s30  ;;  %s1775_s27 = smov (%p48_p5, %s1773_s27), 0 }
  0x21   : > { %1735 = sst [smem:[#allocation16_spill]] %s1775_s27  ;;  %p1486_p7 = por %p1475_p6, %p265_p4 }
  0x22   : > { %p289_p8 = scmp.ne.s32.totalorder %s1304_s15, %s1300_s14  ;;  %s244_s16 = ssub.s32 %s1332_s22, %s1775_s27 }
  0x23   : > { %s1736_s10 = scalar_select %p1486_p7, 1, 0 }
  0x24   : > { %p295_p9 = scmp.ne.s32.totalorder %s1300_s14, %s1296_s13  ;;  %p247_p10 = scmp.eq.s32.totalorder %s244_s16, 0 }
  0x25   : > { %s274_s25 = sor.u32 %s273_s12, %s244_s16  ;;  %p1498_p12 = por %p289_p8, %p1460_p2 }
  0x26   : > { %p277_p11 = scmp.eq.s32.totalorder %s274_s25, 0  ;;  %p1510_p13 = por %p295_p9, %p1475_p6 }
  0x27   : > { %s1503_s26 = scalar_select %p247_p10, %s1316_s18, %s249_s28  }
  0x28   : > { %s1506_s21 = scalar_select %p277_p11, %s1304_s15, %s279_s24  }
  0x29   : > { %1738 = sst [smem:[#allocation17_spill]] %s1503_s26  ;;  %p978_p0 = scmp.ge.s32.totalorder %s1336_s23, 1 }
  0x2a   : > { %s1739_s30 = scalar_select %p1510_p13, 1, 0 }
  0x2b   : > { %p345_p1 = scmp.lt.s32.totalorder %s1336_s23, 9 }
  0x2d   : > { %p346_p4 = pnand %p978_p0, %p345_p1 }
  0x2e   : > { %s1711_s16 = sand.u32 (!%p346_p4), 1, %s1312_s17   ;;  %s1518_s29 = sshll.u32 (!%p346_p4), %s1320_s19, 4 }
  0x2f   : > { %349 = sbr.rel (%p346_p4) target bundleno = 1251 (0x4e3), region = 56  ;;  %s1522_s28 = sshll.u32 (!%p346_p4), %s1711_s16, 3 }
  0x30   : > { %s1740_s2 = sld [smem:[#allocation20_spill]] (!%p346_p4)  ;;  %p387_p2 = scmp.lt.s32.totalorder (!%p346_p4), %s1324_s20, 1 }
  0x31   : > { %s1741_s1 = sld [smem:[#allocation19_spill]] (!%p346_p4)  ;;  %p1007_p5 = scmp.ne.s32.totalorder (!%p346_p4), %s1320_s19, 0 }
  0x32   : > { %s1742_s0 = sld [smem:[#allocation18_spill]] (!%p346_p4) }
  0x33   : > { %s1743_s3 = sld [smem:[#allocation21_spill]] (!%p346_p4) }
  0x34   : > { %v1338_v0 = vmov 0.0   ;;  %vm1339_vm0 = vmmov 0   ;;  %s388_s11 = scalar_select %p387_p2, %s1324_s20, 1  ;;  %vm424_vm1 = vcmask 261120   ;;  %vm537_vm2 = vcmask 60416  }
  0x35   : > { %1035 = vmatprep.subr.bf16.mxu0 %v1338_v0  ;;  %1039 = vmatprep.mubr.msk.bf16.mxu0 %vm1339_vm0, %v1338_v0  ;;  %s1744_s6 = sld [smem:[#allocation24_spill]]  ;;  %vm625_vm3 = vcmask 64512   ;;  %vm692_vm4 = vcmask 1043456  }
  0x36   : > { %s399_s24 = scalar_lea.vmem %s1740_s2, %s1518_s29  ;;  %1043 = vmatprep.subr.bf16.mxu1 %v1338_v0  ;;  %1047 = vmatprep.mubr.msk.bf16.mxu1 %vm1339_vm0, %v1338_v0  ;;  %s981_s12 = sshll.u32 %s388_s11, 2 }
  0x37   : > { %v1180_v1 = vld [vmem:[%s399_s24 + $0x8] sm:$0xff]   ;;  %s551_s27 = scalar_lea.vmem %s1741_s1, %s1518_s29  ;;  %v1181_v2 = vld [vmem:[%s399_s24] sm:$0xff]   ;;  %s1745_s5 = sld [smem:[#allocation23_spill]] }
  0x38   : > { %1036 = vmatpush3.bf16.msra.mxu0 %v1180_v1  ;;  %s390_s26 = scalar_lea.vmem %s1742_s0, %s981_s12  ;;  %v1182_v3 = vld [vmem:[%s551_s27 + $0x8] sm:$0xff]   ;;  %v1183_v5 = vld [vmem:[%s551_s27] sm:$0xff]   ;;  %s1746_s7 = sld [smem:[#allocation25_spill]] }
  0x39   : > { %1037 = vmatprep.subr.bf16.mxu0 %v1338_v0  ;;  %v396_v4 = vld [vmem:[%s390_s26] sm:$0xf]  ;;  %s469_s27 = scalar_lea.vmem %s1743_s3, %s1518_s29  ;;  %s1567_s29 = sshll.u32 %s1320_s19, 2 }
  0x3a   : > { %v548_v6 = vld [vmem:[%s390_s26] sm:$0xf]  ;;  %v1184_v7 = vld [vmem:[%s469_s27 + $0x8] sm:$0xff]   ;;  %s536_s2 = scalar_lea.vmem [#allocation2], %s1567_s29  ;;  %s541_s16 = scalar_lea.vmem [#allocation3], %s1567_s29 }
  0x3b   : > { %1044 = vmatpush3.bf16.msra.mxu1 %v1184_v7  ;;  %v1185_v8 = vld [vmem:[%s469_s27] sm:$0xff]   ;;  %s404_s24 = scalar_lea.vmem %s1744_s6, %s1320_s19  ;;  %s1747_s4 = sld [smem:[#allocation22_spill]] }
  0x3c   : > { %1038 = vmatpush3.bf16.msra.mxu0 %v1181_v2  ;;  %1045 = vmatprep.subr.bf16.mxu1 %v1338_v0  ;;  %v984_v9 = vld [vmem:[%s404_s24] ss:$0 sm:$0xff] }
  0x3d   : > { %1051 = vmatprep.subr.bf16.mxu0 %v1338_v0  ;;  %s556_s12 = scalar_lea.vmem %s1745_s5, %s1320_s19 }
  0x3e   : > { %v997_v16 = vld [vmem:[%s556_s12] ss:$0 sm:$0xff]  ;;  %s474_s26 = scalar_lea.vmem %s1746_s7, %s1320_s19  ;;  %s1714_s12 = sand.u32 1, %s1300_s14  }
  0x3f   : > { %1040 = vmatmul.mubr.msk.bf16.vlgmr.msra.gmra.mxu0 %vm424_vm1, %v396_v4  ;;  %1046 = vmatpush3.bf16.msra.mxu1 %v1185_v8  ;;  %v989_v26 = vld [vmem:[%s474_s26] ss:$0 sm:$0xff] }
  0x40   : > { %1052 = vmatpush3.bf16.msra.mxu0 %v1182_v3  ;;  %1055 = vmatprep.mubr.msk.bf16.mxu0 %vm1339_vm0, %v1338_v0 }
  0x41   : > { %1053 = vmatprep.subr.bf16.mxu0 %v1338_v0  ;;  %1059 = vmatprep.subr.bf16.mxu1 %v1338_v0  ;;  %s738_s11 = scalar_lea.vmem %s1747_s4, %s1567_s29  ;;  %s379_s29 = scalar_lea.vmem [#allocation5], %s1522_s28 }
  0x42   : > { %1048 = vmatmul.mubr.msk.bf16.vlgmr.msra.gmra.mxu1 %vm424_vm1, %v396_v4  ;;  %v739_v45 = vld [vmem:[%s738_s11] sm:$0xf] }
  0x43   : > { %1061 = vmatprep.mubr.msk.bf16.mxu1 %vm1339_vm0, %v1338_v0  ;;  %v744_v46 = vsel %vm692_vm4, %v739_v45, 0 }
  0x44   : > { %1054 = vmatpush3.bf16.msra.mxu0 %v1183_v5 }
  0x45   : > { %1065 = vmatprep.subr.bf16.mxu0 %v1338_v0 }
  0x47   : > { %1056 = vmatmul.mubr.msk.bf16.vlgmr.msra.gmra.mxu0 %vm424_vm1, %v548_v6 }
  0x48   : > { %1067 = vmatprep.mubr.msk.bf16.mxu0 %vm1339_vm0, %v1338_v0 }
  0xff   : > { %v462_v10 = vpop.f32.mrf.mxu0 }
 0x100   : > { %v463_v11 = vadd.f32 %v984_v9, %v462_v10 }
 0x101   : > { %v1041_v12 = vpop.f32.mrf.mxu0 }
 0x102   : > { %v534_v13 = vpack.c.bf16 %v463_v11, %v463_v11  ;;  %v528_v27 = vpop.f32.mrf.mxu1 }
 0x103   : > { %v465_v14 = vpop.f32.mrf.mxu0  ;;  %v529_v28 = vadd.f32 %v989_v26, %v528_v27 }
 0x104   : > { %538 = vst.msk [vmem:[%s536_s2] sm:$0xf] %vm537_vm2, %v534_v13  ;;  %v1049_v29 = vpop.f32.mrf.mxu1 }
 0x105   : > { %v1042_v15 = vpop.f32.mrf.mxu0  ;;  %v539_v30 = vpack.c.bf16 %v529_v28, %v529_v28 }
 0x106   : > { %v531_v31 = vpop.f32.mrf.mxu1 }
 0x107   : > { %v614_v17 = vpop.f32.mrf.mxu0  ;;  %542 = vst.msk [vmem:[%s541_s16] sm:$0xf] %vm537_vm2, %v539_v30 }
 0x108   : > { %v615_v18 = vadd.f32 %v997_v16, %v614_v17  ;;  %v1050_v32 = vpop.f32.mrf.mxu1 }
 0x109   : > { %v1057_v19 = vpop.f32.mrf.mxu0 }
 0x10a   : > { %v620_v22 = vmul.f32 0.35355338, %v615_v18 }
 0x10b   : > { %v617_v20 = vpop.f32.mrf.mxu0  ;;  %v624_v21 = vld [vmem:[%s536_s2] sm:$0xf]  ;;  %s1597_s2 = sshll.u32 %s1714_s12, 2 }
 0x10c   : > { %v630_v23 = vsel %vm625_vm3, %v624_v21, 0  ;;  %v621_v25 = vpack.c.bf16 %v620_v22, %v620_v22  ;;  %s1715_s22 = scalar_lea.vmem [#allocation7], %s1597_s2 }
 0x10d   : > { %1060 = vmatpush3.bf16.xpose.msra.mxu1 %v630_v23  ;;  %v1058_v24 = vpop.f32.mrf.mxu0 }
 0x10e   : > { %1071 = vmatprep.subr.bf16.mxu1 %v1338_v0  ;;  %v688_v33 = vld [vmem:[%s541_s16] sm:$0xf] }
 0x10f   : > { %v694_v34 = vsel %vm692_vm4, %v688_v33, 0 }
 0x110   : > { %1066 = vmatpush3.bf16.msra.mxu0 %v694_v34 }
 0x114   : > { %1062 = vmatmul.mubr.msk.bf16.vlgmr.msra.gmra.mxu1 %vm625_vm3, %v621_v25 }
 0x115   : > { %1073 = vmatprep.mubr.msk.bf16.mxu1 %vm1339_vm0, %v1338_v0  ;;  %1072 = vmatpush3.bf16.msra.mxu1 %v744_v46 }
 0x1d4   : > { %v666_v35 = vpop.f32.mrf.mxu1 }
 0x1d5   : > { %v672_v36 = vsel %vm625_vm3, %v666_v35, -inf }
 0x1d6   : > { %673 = vmax.xlane.f32.xlu0 %v672_v36  ;;  %v1063_v37 = vpop.f32.mrf.mxu1 }
 0x1d8   : > { %v669_v38 = vpop.f32.mrf.mxu1 }
 0x1da   : > { %v1064_v39 = vpop.f32.mrf.mxu1 }
 0x25f   : > { %v674_v40 = vpop.xlane.xlu0 %673 }
 0x260   : > { %v675_v41 = vsub.f32 %v666_v35, %v674_v40 }
 0x262   : > { %v676_v42 = vmul.f32 1.442695, %v675_v41 }
 0x264   : > { %1186 = vpow2.f32 %v676_v42 }
 0x271   : > { %v1187_v43 = vpop.eup %1186 }
 0x272   : > { %v678_v44 = vsel %vm625_vm3, %v1187_v43, 0.0 }
 0x273   : > { %679 = vadd.xlane.f32.xlu0 %v678_v44 }
 0x2fc   : > { %v680_v47 = vpop.xlane.xlu0 %679 }
 0x2fd   : > { %1188 = vrcp.f32 %v680_v47 }
 0x30a   : > { %v1189_v48 = vpop.eup %1188 }
 0x30b   : > { %v682_v49 = vmul.f32 %v1189_v48, %v1187_v43 }
 0x30d   : > { %v683_v50 = vpack.c.bf16 %v682_v49, %v682_v49 }
 0x30f   : > { %685 = vst.msk [vmem:[%s1715_s22] sm:$0xf] %vm537_vm2, %v683_v50  ;;  %1068 = vmatmul.mubr.msk.bf16.vlgmr.msra.gmra.mxu0 %vm625_vm3, %v683_v50 }
 0x3cf   : > { %v730_v51 = vpop.f32.mrf.mxu0 }
 0x3d0   : > { %v736_v52 = vpack.c.bf16 %v730_v51, %v730_v51 }
 0x3d1   : > { %v1069_v53 = vpop.f32.mrf.mxu0 }
 0x3d2   : > { %1074 = vmatmul.mubr.msk.bf16.vlgmr.msra.gmra.mxu1 %vm625_vm3, %v736_v52 }
 0x3d3   : > { %v733_v54 = vpop.f32.mrf.mxu0 }
 0x3d5   : > { %v1070_v55 = vpop.f32.mrf.mxu0 }
 0x492   : > { %v780_v56 = vpop.f32.mrf.mxu1 }
 0x494   : > { %v1075_v57 = vpop.f32.mrf.mxu1  ;;  %789 = sbr.rel (%p1007_p5) target bundleno = 1179 (0x49b), region = 64 }
 0x496   : > { %v783_v58 = vpop.f32.mrf.mxu1 }
 0x498   : > { %v1076_v59 = vpop.f32.mrf.mxu1 }
 0x499   : > { %v1340_v60 = vmov 0.0  }
 0x49a   : > { %790 = vst.msk [vmem:[#allocation4] sm:$0xff] %vm424_vm1, %v1340_v60 }
 0x49b PF: > { %p1008_p6 = scmp.ne.s32.totalorder %s1320_s19, 3 }
 0x49c   : > { %s1748_s8 = sld [smem:[#allocation26_spill]] (!%p1008_p6) }
 0x4a0   : > { %797 = sbr.rel (%p1008_p6) target bundleno = 1199 (0x4af), region = 68 }
 0x4a1   : > { %v791_v61 = vld [vmem:[#allocation4] sm:$0xff] }
 0x4a2   : > { %v792_v62 = vadd.f32 %v791_v61, %v780_v56 }
 0x4a4   : > { %793 = vst.msk [vmem:[#allocation4] sm:$0xff] %vm424_vm1, %v792_v62 }
 0x4a5   : > { %v1009_v0 = vld [vmem:[%s1748_s8] ss:$0 sm:$0xff] }
 0x4ab   : > { %v798_v63 = vld [vmem:[#allocation4] sm:$0xff] }
 0x4ac   : > { %v806_v1 = vadd.f32 %v1009_v0, %v798_v63 }
 0x4ae   : > { %807 = vst.msk [vmem:[%s379_s29] sm:$0xff] %vm424_vm1, %v806_v1 }
 0x4af PF: > { %s1012_s16 = sshll.u32 %s1324_s20, 7  ;;  %s1750_s11 = sld [smem:[#allocation27_spill]] }
 0x4b0   : > { %s828_s22 = sshll.u32 %s379_s29, 4  ;;  %s1751_s0 = sand.u32 1, %s1312_s17   ;;  %s829_s22 = int_to_ptr.vmem [resolvable:$true] %s828_s22 }
 0x4b1   : > { %s809_s1 = scalar_lea.sflag [#allocation6], %s1751_s0  ;;  %s1190_s3 = scalar_lea.vmem %s829_s22, 128 }
 0x4b2   : > { %p1191_p8 = scmp.ne.s32.totalorder %s829_s22, %s1190_s3  ;;  %s1341_s27 = smov [#allocation5]  }
 0x4b3   : > { %s1194_s26 = sshll.u32 %s1341_s27, 4  ;;  %s1195_s26 = int_to_ptr.vmem [resolvable:$false] %s1194_s26 }
 0x4b4   : > { %p1192_p9 = pnand %p1191_p8, %p1469_p3  ;;  %s1196_s4 = scalar_lea.vmem %s1195_s26, 256 }
 0x4b5   : > { %s826_s12 = scalar_lea.hbm %s1750_s11, %s1012_s16  ;;  %p1197_p11 = scmp.lt.s32.totalorder %s829_s22, %s1195_s26 }
 0x4b6   : > { %p1193_p10 = pneg %p1192_p9  ;;  %p1198_p0 = scmp.lt.s32.totalorder %s1196_s4, %s1190_s3 }
 0x4b8   : > { %p1199_p1 = por %p1198_p0, %p1197_p11 }
 0x4ba   : > { %p1200_p4 = pnand %p1199_p1, %p1193_p10 }
 0x4bc   : > { %1203 = shalt.err (!%p1200_p4)
}
 0x4bd   : > { %s1204_s24 = scalar_lea.hbm %s826_s12, 128  ;;  %s1208_s16 = scalar_lea.hbm %s1750_s11, 256 }
 0x4be   : > { %p1205_p2 = scmp.ne.s32.totalorder %s826_s12, %s1204_s24  ;;  %p1209_p8 = scmp.lt.s32.totalorder %s826_s12, %s1750_s11 }
 0x4bf   : > { %p1210_p9 = scmp.lt.s32.totalorder %s1208_s16, %s1204_s24 }
 0x4c0   : > { %p1206_p5 = pnand %p1205_p2, %p1469_p3 }
 0x4c1   : > { %p1211_p13 = por %p1210_p9, %p1209_p8 }
 0x4c2   : > { %p1207_p6 = pneg %p1206_p5 }
 0x4c4   : > { %p1212_p7 = pnand %p1211_p13, %p1207_p6 }
 0x4c6   : > { %1215 = shalt.err (!%p1212_p7)
}
 0x4c7   : > { %1077 = dma.vmem_to_hbm [thread:$0]  (%p1469_p3), %s829_s22, 128, %s826_s12, %s809_s1  }
 0x4c8   : > { %s1013_s3 = sshll.u32 %s1324_s20, 2  ;;  %s1752_s4 = scalar_lea.vmem [#allocation7], %s1597_s2 }
 0x4c9   : > { %s844_s27 = sshll.u32 %s1752_s4, 4  ;;  %s840_s26 = sadd.s32 %s1320_s19, %s1013_s3  ;;  %s845_s27 = int_to_ptr.vmem [resolvable:$true] %s844_s27 }
 0x4ca   : > { %s1014_s0 = sshll.u32 %s840_s26, 6  ;;  %s1753_s24 = sld [smem:[#allocation28_spill]] }
 0x4cb   : > { %s1754_s25 = sand.u32 1, %s1300_s14   ;;  %s1216_s7 = scalar_lea.vmem %s845_s27, 64 }
 0x4cc   : > { %s814_s6 = scalar_lea.sflag [#allocation8], %s1754_s25  ;;  %p1217_p7 = scmp.ne.s32.totalorder %s845_s27, %s1216_s7 }
 0x4cd   : > { %s1342_s28 = smov [#allocation7]  }
 0x4ce   : > { %p1218_p13 = pnand %p1217_p7, %p1498_p12  ;;  %s1220_s8 = sshll.u32 %s1342_s28, 4  ;;  %s1221_s8 = int_to_ptr.vmem [resolvable:$false] %s1220_s8 }
 0x4cf   : > { %s1222_s1 = scalar_lea.vmem %s1221_s8, 128  ;;  %p1223_p3 = scmp.lt.s32.totalorder %s845_s27, %s1221_s8 }
 0x4d0   : > { %s842_s16 = scalar_lea.hbm %s1753_s24, %s1014_s0  ;;  %p1219_p10 = pneg %p1218_p13 }
 0x4d1   : > { %p1224_p11 = scmp.lt.s32.totalorder %s1222_s1, %s1216_s7 }
 0x4d3   : > { %p1225_p0 = por %p1224_p11, %p1223_p3 }
 0x4d5   : > { %p1226_p1 = pnand %p1225_p0, %p1219_p10 }
 0x4d7   : > { %1229 = shalt.err (!%p1226_p1)
}
 0x4d8   : > { %s1230_s19 = scalar_lea.hbm %s842_s16, 64  ;;  %s1234_s2 = scalar_lea.hbm %s1753_s24, 512 }
 0x4d9   : > { %p1231_p4 = scmp.ne.s32.totalorder %s842_s16, %s1230_s19  ;;  %p1235_p6 = scmp.lt.s32.totalorder %s842_s16, %s1753_s24 }
 0x4da   : > { %p1236_p8 = scmp.lt.s32.totalorder %s1234_s2, %s1230_s19 }
 0x4db   : > { %p1232_p2 = pnand %p1231_p4, %p1498_p12 }
 0x4dc   : > { %p1237_p9 = por %p1236_p8, %p1235_p6 }
 0x4dd   : > { %p1233_p5 = pneg %p1232_p2 }
 0x4df   : > { %p1238_p7 = pnand %p1237_p9, %p1233_p5 }
 0x4e1   : > { %1241 = shalt.err (!%p1238_p7)
}
 0x4e2   : > { %1078 = dma.vmem_to_hbm [thread:$0]  (%p1498_p12), %s845_s27, 64, %s842_s16, %s814_s6  }
 0x4e3 PF: > { %s1755_s7 = sld [smem:[#allocation11_spill]]  ;;  %p1088_p13 = scmp.ge.s32.totalorder %s1336_s23, 2 }
 0x4e4   : > { %p1756_p10 = scmp.ne.s32.totalorder %s1736_s10, 0 }
 0x4e6   : > { %p1082_p3 = pnand %p1088_p13, %p1756_p10 }
 0x4e8   : > { %p1083_p11 = pneg %p1082_p3 }
 0x4e9   : > { %s856_s8 = sand.u32 1, %s1755_s7  }
 0x4ea   : > { %s857_s4 = scalar_lea.sflag [#allocation6], %s856_s8 }
 0x4eb   : > { %1287 = dma.done.wait (%p1083_p11), %s857_s4, 128  }
 0x4ec   : > { %1289 = vsyncadd (%p1083_p11), %s857_s4, 4294967168  ;;  %s865_s26 = sand.u32 1, %s1296_s13   ;;  %p1757_p0 = scmp.ne.s32.totalorder %s1739_s30, 0 }
 0x4ed   : > { %s866_s9 = scalar_lea.sflag [#allocation8], %s865_s26 }
 0x4ee   : > { %p1085_p1 = pnand %p1088_p13, %p1757_p0 }
 0x4f0   : > { %p1086_p4 = pneg %p1085_p1 }
 0x4f2   : > { %1291 = dma.done.wait (%p1086_p4), %s866_s9, 64  }
 0x4f3   : > { %1293 = vsyncadd (%p1086_p4), %s866_s9, 4294967232  ;;  %s27_s23 = sadd.s32 1, %s1336_s23   ;;  %s1758_s6 = sld [smem:[#allocation17_spill]] }
 0x4f4   : > { %p24_p12 = scmp.ge.s32.totalorder %s27_s23, 10   ;;  %s1759_s19 = sld [smem:[#allocation12_spill]] }
 0x4f5   : > { %s1760_s20 = sld [smem:[#allocation13_spill]]  ;;  %s1763_s13 = smov %s1300_s14 }
 0x4f6   : > { %s1761_s10 = sld [smem:[#allocation14_spill]]  ;;  %s1764_s14 = smov %s1304_s15 }
 0x4f7   : > { %s1762_s22 = sld [smem:[#allocation16_spill]]  ;;  %s1765_s15 = smov %s1506_s21 }
 0x4f8   : > { %s1766_s16 = smov %s1312_s17  ;;  %s1767_s17 = smov %s1316_s18 }
 0x4f9   : > { %s1768_s18 = smov %s1758_s6  ;;  %26 = sbr.rel (!%p24_p12) target bundleno = 21 (0x15), region = 132 }
 0x4fc   : > { %s1769_s21 = smov %s1761_s10 }
 0x4fe   :  { %871 = vsyncpa [#allocation6], 1 }
 0x4ff   :  { %873 = vsyncpa [#allocation6 + $0x1], 1 }
 0x500   :  { %874 = vsyncpa [#allocation8], 1 }
 0x501   :  { %876 = vsyncpa [#allocation8 + $0x1], 1 }

</bundles_post_ra>
